<compile_context>
chip_gen: v5e
topology: v5e:2x2
jax: 0.10.0
libtpu: 0.0.40
codegen_flags: <defaults>
</compile_context>

<pallas_src>
import functools

import jax
import jax.numpy as jnp
from jax.experimental import pallas as pl
from jax.experimental.pallas import tpu as pltpu


def _memnn_kernel(x_ref, we_ref, mem_ref, wo_ref, bias_ref, onehot_ref, out_ref,
                  *, eps, h, t, chunk_rows, n_chunks):
    # x_ref:     (TB*T, D_in)  input dtype (f32/bf16), unpadded feature dim
    # we_ref:    (D_in, Hp)    bf16   embedding weight (H zero-padded to Hp)
    # mem_ref:   (Mp, Hp)      bf16   memory bank (padded slots are zero rows)
    # wo_ref:    (Hp, Op)      bf16   output projection (col O spare -> carries ev)
    # bias_ref:  (1, Mp)       f32    0 for real slots, -1e30 for padded slots
    # onehot_ref:(1, Op)       f32    1.0 at column O, else 0
    # out_ref:   (TB*T, Op)    bf16
    we = we_ref[...]
    mem = mem_ref[...]
    wo = wo_ref[...]
    bias = bias_ref[...]
    onehot = onehot_ref[...]

    inv_h = 1.0 / h
    inv_eps = 1.0 / eps
    cs = chunk_rows // t      # whole samples per compute chunk

    def compute_chunk(c):
        r0 = c * chunk_rows
        if not isinstance(r0, int):
            r0 = pl.multiple_of(r0, chunk_rows)

        # ---- embedding_module: linear projection (bf16 MXU, f32 acc) ----
        x = x_ref[pl.ds(r0, chunk_rows), :].astype(jnp.bfloat16)       # (CH, D)
        emb = jnp.dot(x, we, preferred_element_type=jnp.float32)        # (CH, Hp) f32

        # ---- isextreme: per-timestep score, per-sample (over T) centring ----
        # (sum / true H so zero-padded H columns do not change the mean)
        mag = jnp.sum(jnp.abs(emb), axis=-1, keepdims=True) * inv_h     # (CH, 1)
        mag3 = mag.reshape(cs, t, 1)                                    # free (T=8 sublane)
        mu = jnp.mean(mag3, axis=1, keepdims=True)                      # (cs, 1, 1)
        ev = jax.nn.sigmoid((mag3 - mu) * inv_eps).reshape(chunk_rows, 1)  # (CH, 1) f32

        # ---- attention over memory slots (contract on H axis, no transpose) ----
        scores = jax.lax.dot_general(
            emb.astype(jnp.bfloat16), mem,
            dimension_numbers=(((1,), (1,)), ((), ())),
            preferred_element_type=jnp.float32) + bias                  # (CH, Mp) f32
        smax = jnp.max(scores, axis=-1, keepdims=True)
        p = jnp.exp(scores - smax)
        attn = p * pl.reciprocal(jnp.sum(p, axis=-1, keepdims=True) + eps,
                                 approx=True)                           # (CH, Mp)
        ctx = jnp.dot(attn.astype(jnp.bfloat16), mem,
                      preferred_element_type=jnp.float32)               # (CH, Hp) f32

        # ---- gated blend + output projection ----
        gated = ev * ctx + (1.0 - ev) * emb                             # (CH, Hp) f32
        out = jnp.dot(gated.astype(jnp.bfloat16), wo,
                      preferred_element_type=jnp.float32)               # (CH, Op) f32

        # Pack ev into the spare (zero-weight) column O via a one-hot FMA.
        out = out + ev * onehot
        out_ref[pl.ds(r0, chunk_rows), :] = out.astype(out_ref.dtype)

    if n_chunks == 1:
        compute_chunk(0)
    else:
        # Chunked inner loop bounds live f32 intermediates (vreg pressure)
        # while keeping the large DMA tile.
        def body(c, carry):
            compute_chunk(c)
            return carry
        jax.lax.fori_loop(0, n_chunks, body, 0)


def _round_up(a, mult):
    return (a + mult - 1) // mult * mult


def memorynn_forward(x, w_embed, memory, w_out, *, eps, row_target=2048):
    """x: (B, T, D_in). Returns (out (B, T, O), ev (B, T, 1))."""
    B, T, D_in = x.shape
    H = w_embed.shape[1]
    M = memory.shape[0]
    O = w_out.shape[1]

    LANE = 128
    Hp = _round_up(H, LANE)
    Mp = _round_up(M, LANE)
    Op = _round_up(O + 1, LANE)          # +1 spare lane-dense column carries ev

    # Samples per grid step: ~row_target MXU rows, but always >=2 grid steps
    # when B >= 2 so both v7x TensorCores get work.
    TB = max(1, row_target // T)
    TB = min(TB, max(1, -(-B // 2)))
    # Inner compute chunk of ~256 rows (whole samples so the per-sample
    # isextreme mean is preserved); make TB a multiple of the chunk size.
    CS = max(1, min(TB, max(1, 256 // T)))
    TB = max(CS, (TB // CS) * CS)
    chunk_rows = CS * T
    n_chunks = TB // CS

    Bp = _round_up(B, TB)
    grid = Bp // TB

    bf = jnp.bfloat16
    # x: flatten to 2D (free, row-major), keep original dtype & true D_in;
    # only pad batch rows if B is not a multiple of TB.
    xf = x.reshape(B * T, D_in)
    if Bp > B:
        xf = jnp.pad(xf, ((0, (Bp - B) * T), (0, 0)))
    # Weights are tiny: cast + zero-pad lane dims once.
    wep = jnp.pad(w_embed.astype(bf), ((0, 0), (0, Hp - H)))
    memp = jnp.pad(memory.astype(bf), ((0, Mp - M), (0, Hp - H)))
    wop = jnp.pad(w_out.astype(bf), ((0, Hp - H), (0, Op - O)))
    # Precomputed additive softmax mask and ev-packing one-hot (DMA'd once).
    slot_bias = jnp.full((1, Mp), -1e30, jnp.float32).at[0, :M].set(0.0)
    onehot_o = jnp.zeros((1, Op), jnp.float32).at[0, O].set(1.0)

    kernel = functools.partial(
        _memnn_kernel, eps=eps, h=H, t=T, chunk_rows=chunk_rows, n_chunks=n_chunks)

    rows_total = Bp * T
    flops = 2 * rows_total * (D_in * Hp + 2 * Hp * Mp + Hp * Op)
    transcendentals = rows_total * (Mp + 2)      # exp over slots + sigmoid + recip
    bytes_accessed = (xf.size * xf.dtype.itemsize
                      + rows_total * Op * 2
                      + (wep.size + memp.size + wop.size) * 2
                      + (slot_bias.size + onehot_o.size) * 4)

    out_full = pl.pallas_call(
        kernel,
        out_shape=jax.ShapeDtypeStruct((Bp * T, Op), jnp.bfloat16),
        grid=(grid,),
        in_specs=[
            pl.BlockSpec((TB * T, D_in), lambda b: (b, 0)),   # x (streamed)
            pl.BlockSpec((D_in, Hp), lambda b: (0, 0)),       # w_embed
            pl.BlockSpec((Mp, Hp), lambda b: (0, 0)),         # memory bank
            pl.BlockSpec((Hp, Op), lambda b: (0, 0)),         # w_out
            pl.BlockSpec((1, Mp), lambda b: (0, 0)),          # slot mask bias
            pl.BlockSpec((1, Op), lambda b: (0, 0)),          # ev one-hot
        ],
        out_specs=pl.BlockSpec((TB * T, Op), lambda b: (b, 0)),
        compiler_params=pltpu.CompilerParams(
            dimension_semantics=("parallel",)),
        cost_estimate=pl.CostEstimate(
            flops=flops, transcendentals=transcendentals,
            bytes_accessed=bytes_accessed),
    )(xf, wep, memp, wop, slot_bias, onehot_o)

    out3 = out_full.reshape(Bp, T, Op)
    out = out3[:B, :, :O].astype(x.dtype)
    ev = out3[:B, :, O:O + 1].astype(jnp.float32)
    return out, ev


if __name__ == "__main__":
    # Module hyper-parameters (small, consistent with constructor signature).
    hidden_size = 32
    output_size = 32
    num_layers = 1          # TODO(synk): unused by the stub forward; single layer.
    memory_size = 16
    time_step = 8
    eps = 1e-6

    B, D_in = 2, hidden_size

    key = jax.random.PRNGKey(0)
    kx, ke, km, ko = jax.random.split(key, 4)
    x = jax.random.normal(kx, (B, time_step, D_in), dtype=jnp.float32)
    w_embed = 0.1 * jax.random.normal(ke, (D_in, hidden_size), dtype=jnp.float32)
    memory = 0.1 * jax.random.normal(km, (memory_size, hidden_size), dtype=jnp.float32)
    w_out = 0.1 * jax.random.normal(ko, (hidden_size, output_size), dtype=jnp.float32)

    out, ev = memorynn_forward(x, w_embed, memory, w_out, eps=eps)
    jax.block_until_ready((out, ev))

    assert out.shape == (B, time_step, output_size)
    assert ev.shape == (B, time_step, 1)
    assert bool(jnp.all(jnp.isfinite(out))) and bool(jnp.all(jnp.isfinite(ev)))
    print("KERNEL_OK")
</pallas_src>

<mosaic_0001>
module attributes {stable_mosaic.version = 11 : i64} {
  func.func @_memnn_kernel(%arg0: i32, %arg1: memref<8x32xf32, #tpu.memory_space<vmem>>, %arg2: memref<32x128xbf16, #tpu.memory_space<vmem>>, %arg3: memref<128x128xbf16, #tpu.memory_space<vmem>>, %arg4: memref<128x128xbf16, #tpu.memory_space<vmem>>, %arg5: memref<1x128xf32, #tpu.memory_space<vmem>>, %arg6: memref<1x128xf32, #tpu.memory_space<vmem>>, %arg7: memref<8x128xbf16, #tpu.memory_space<vmem>>) attributes {dimension_semantics = [#tpu.dimension_semantics<parallel>], iteration_bounds = array<i64: 2>, scalar_prefetch = 0 : i64, scratch_operands = 0 : i64, tpu.core_type = #tpu.core_type<tc>, window_params = [{transform_indices = @transform_0, window_bounds = array<i64: 8, 32>}, {pipeline_mode = #tpu.pipeline_mode<synchronous>, transform_indices = @transform_1, window_bounds = array<i64: 32, 128>}, {pipeline_mode = #tpu.pipeline_mode<synchronous>, transform_indices = @transform_2, window_bounds = array<i64: 128, 128>}, {pipeline_mode = #tpu.pipeline_mode<synchronous>, transform_indices = @transform_3, window_bounds = array<i64: 128, 128>}, {pipeline_mode = #tpu.pipeline_mode<synchronous>, transform_indices = @transform_4, window_bounds = array<i64: 1, 128>}, {pipeline_mode = #tpu.pipeline_mode<synchronous>, transform_indices = @transform_5, window_bounds = array<i64: 1, 128>}, {transform_indices = @transform_6, window_bounds = array<i64: 8, 128>}]} {
    %c0 = arith.constant 0 : index
    %c0_0 = arith.constant 0 : index
    %0 = vector.load %arg2[%c0, %c0_0] : memref<32x128xbf16, #tpu.memory_space<vmem>>, vector<32x128xbf16>
    %c0_1 = arith.constant 0 : index
    %c0_2 = arith.constant 0 : index
    %1 = vector.load %arg3[%c0_1, %c0_2] : memref<128x128xbf16, #tpu.memory_space<vmem>>, vector<128x128xbf16>
    %c0_3 = arith.constant 0 : index
    %c0_4 = arith.constant 0 : index
    %2 = vector.load %arg4[%c0_3, %c0_4] : memref<128x128xbf16, #tpu.memory_space<vmem>>, vector<128x128xbf16>
    %c0_5 = arith.constant 0 : index
    %c0_6 = arith.constant 0 : index
    %3 = vector.load %arg5[%c0_5, %c0_6] : memref<1x128xf32, #tpu.memory_space<vmem>>, vector<1x128xf32>
    %c0_7 = arith.constant 0 : index
    %c0_8 = arith.constant 0 : index
    %4 = vector.load %arg6[%c0_7, %c0_8] : memref<1x128xf32, #tpu.memory_space<vmem>>, vector<1x128xf32>
    %c0_9 = arith.constant 0 : index
    %c0_10 = arith.constant 0 : index
    %5 = vector.load %arg1[%c0_9, %c0_10] : memref<8x32xf32, #tpu.memory_space<vmem>>, vector<8x32xf32>
    %6 = arith.truncf %5 : vector<8x32xf32> to vector<8x32xbf16>
    %cst = arith.constant dense<0.000000e+00> : vector<8x128xf32>
    %7 = tpu.matmul %6, %0, %cst {dimension_numbers = #tpu.dot_dimension_numbers<[1], [0], [0], [1], [0, 0, 1, 1], [], []>} : vector<8x32xbf16>, vector<32x128xbf16>, vector<8x128xf32> -> vector<8x128xf32>
    %8 = math.absf %7 : vector<8x128xf32>
    %cst_11 = arith.constant dense<0.000000e+00> : vector<8xf32>
    %9 = vector.multi_reduction <add>, %8, %cst_11 [1] : vector<8x128xf32> to vector<8xf32>
    %10 = vector.shape_cast %9 : vector<8xf32> to vector<8x1xf32>
    %cst_12 = arith.constant 3.125000e-02 : f32
    %11 = vector.broadcast %cst_12 : f32 to vector<8x1xf32>
    %12 = arith.mulf %10, %11 : vector<8x1xf32>
    %13 = vector.shape_cast %12 : vector<8x1xf32> to vector<1x8x1xf32>
    %cst_13 = arith.constant dense<0.000000e+00> : vector<1x1xf32>
    %14 = vector.multi_reduction <add>, %13, %cst_13 [1] : vector<1x8x1xf32> to vector<1x1xf32>
    %15 = vector.shape_cast %14 : vector<1x1xf32> to vector<1x1x1xf32>
    %cst_14 = arith.constant 8.000000e+00 : f32
    %16 = vector.broadcast %cst_14 : f32 to vector<1x1x1xf32>
    %17 = arith.divf %15, %16 : vector<1x1x1xf32>
    %18 = vector.broadcast %17 : vector<1x1x1xf32> to vector<1x8x1xf32>
    %19 = arith.subf %13, %18 : vector<1x8x1xf32>
    %cst_15 = arith.constant 1.000000e+06 : f32
    %20 = vector.broadcast %cst_15 : f32 to vector<1x8x1xf32>
    %21 = arith.mulf %19, %20 : vector<1x8x1xf32>
    %22 = arith.negf %21 : vector<1x8x1xf32>
    %23 = math.exp %22 : vector<1x8x1xf32>
    %cst_16 = arith.constant 1.000000e+00 : f32
    %24 = vector.broadcast %cst_16 : f32 to vector<1x8x1xf32>
    %25 = arith.addf %24, %23 : vector<1x8x1xf32>
    %26 = arith.divf %24, %25 : vector<1x8x1xf32>
    %27 = vector.shape_cast %26 : vector<1x8x1xf32> to vector<8x1xf32>
    %28 = arith.truncf %7 : vector<8x128xf32> to vector<8x128xbf16>
    %cst_17 = arith.constant dense<0.000000e+00> : vector<8x128xf32>
    %29 = tpu.matmul %28, %1, %cst_17 {dimension_numbers = #tpu.dot_dimension_numbers<[1], [1], [0], [0], [0, 0, 1, 0], [], []>} : vector<8x128xbf16>, vector<128x128xbf16>, vector<8x128xf32> -> vector<8x128xf32>
    %30 = vector.broadcast %3 : vector<1x128xf32> to vector<8x128xf32>
    %31 = arith.addf %29, %30 : vector<8x128xf32>
    %cst_18 = arith.constant dense<0xFF800000> : vector<8xf32>
    %32 = vector.multi_reduction <maximumf>, %31, %cst_18 [1] : vector<8x128xf32> to vector<8xf32>
    %33 = vector.shape_cast %32 : vector<8xf32> to vector<8x1xf32>
    %34 = vector.broadcast %33 : vector<8x1xf32> to vector<8x128xf32>
    %35 = arith.subf %31, %34 : vector<8x128xf32>
    %36 = math.exp %35 : vector<8x128xf32>
    %cst_19 = arith.constant dense<0.000000e+00> : vector<8xf32>
    %37 = vector.multi_reduction <add>, %36, %cst_19 [1] : vector<8x128xf32> to vector<8xf32>
    %38 = vector.shape_cast %37 : vector<8xf32> to vector<8x1xf32>
    %cst_20 = arith.constant 9.99999997E-7 : f32
    %39 = vector.broadcast %cst_20 : f32 to vector<8x1xf32>
    %40 = arith.addf %38, %39 : vector<8x1xf32>
    %41 = tpu.reciprocal %40 {approx = true} : vector<8x1xf32> -> vector<8x1xf32>
    %42 = vector.broadcast %41 : vector<8x1xf32> to vector<8x128xf32>
    %43 = arith.mulf %36, %42 : vector<8x128xf32>
    %44 = arith.truncf %43 : vector<8x128xf32> to vector<8x128xbf16>
    %cst_21 = arith.constant dense<0.000000e+00> : vector<8x128xf32>
    %45 = tpu.matmul %44, %1, %cst_21 {dimension_numbers = #tpu.dot_dimension_numbers<[1], [0], [0], [1], [0, 0, 1, 1], [], []>} : vector<8x128xbf16>, vector<128x128xbf16>, vector<8x128xf32> -> vector<8x128xf32>
    %46 = vector.broadcast %27 : vector<8x1xf32> to vector<8x128xf32>
    %47 = arith.mulf %46, %45 : vector<8x128xf32>
    %cst_22 = arith.constant 1.000000e+00 : f32
    %48 = vector.broadcast %cst_22 : f32 to vector<8x1xf32>
    %49 = arith.subf %48, %27 : vector<8x1xf32>
    %50 = vector.broadcast %49 : vector<8x1xf32> to vector<8x128xf32>
    %51 = arith.mulf %50, %7 : vector<8x128xf32>
    %52 = arith.addf %47, %51 : vector<8x128xf32>
    %53 = arith.truncf %52 : vector<8x128xf32> to vector<8x128xbf16>
    %cst_23 = arith.constant dense<0.000000e+00> : vector<8x128xf32>
    %54 = tpu.matmul %53, %2, %cst_23 {dimension_numbers = #tpu.dot_dimension_numbers<[1], [0], [0], [1], [0, 0, 1, 1], [], []>} : vector<8x128xbf16>, vector<128x128xbf16>, vector<8x128xf32> -> vector<8x128xf32>
    %55 = vector.broadcast %27 : vector<8x1xf32> to vector<8x128xf32>
    %56 = vector.broadcast %4 : vector<1x128xf32> to vector<8x128xf32>
    %57 = arith.mulf %55, %56 : vector<8x128xf32>
    %58 = arith.addf %54, %57 : vector<8x128xf32>
    %59 = arith.truncf %58 : vector<8x128xf32> to vector<8x128xbf16>
    %c0_24 = arith.constant 0 : index
    %c0_25 = arith.constant 0 : index
    %60 = vector.load %arg7[%c0_24, %c0_25] : memref<8x128xbf16, #tpu.memory_space<vmem>>, vector<8x128xbf16>
    tpu.vector_store %arg7[%c0_24, %c0_25], %59 {strides = array<i32>} : memref<8x128xbf16, #tpu.memory_space<vmem>>, vector<8x128xbf16>,
    return
  }
  func.func @transform_0(%arg0: i32) -> (i32, i32) {
    %c0_i32 = arith.constant 0 : i32
    %c0_i32_0 = arith.constant 0 : i32
    return %arg0, %c0_i32 : i32, i32
  }
  func.func @transform_1(%arg0: i32) -> (i32, i32) {
    %c0_i32 = arith.constant 0 : i32
    %c0_i32_0 = arith.constant 0 : i32
    %c0_i32_1 = arith.constant 0 : i32
    return %c0_i32, %c0_i32_0 : i32, i32
  }
  func.func @transform_2(%arg0: i32) -> (i32, i32) {
    %c0_i32 = arith.constant 0 : i32
    %c0_i32_0 = arith.constant 0 : i32
    %c0_i32_1 = arith.constant 0 : i32
    return %c0_i32, %c0_i32_0 : i32, i32
  }
  func.func @transform_3(%arg0: i32) -> (i32, i32) {
    %c0_i32 = arith.constant 0 : i32
    %c0_i32_0 = arith.constant 0 : i32
    %c0_i32_1 = arith.constant 0 : i32
    return %c0_i32, %c0_i32_0 : i32, i32
  }
  func.func @transform_4(%arg0: i32) -> (i32, i32) {
    %c0_i32 = arith.constant 0 : i32
    %c0_i32_0 = arith.constant 0 : i32
    %c0_i32_1 = arith.constant 0 : i32
    return %c0_i32, %c0_i32_0 : i32, i32
  }
  func.func @transform_5(%arg0: i32) -> (i32, i32) {
    %c0_i32 = arith.constant 0 : i32
    %c0_i32_0 = arith.constant 0 : i32
    %c0_i32_1 = arith.constant 0 : i32
    return %c0_i32, %c0_i32_0 : i32, i32
  }
  func.func @transform_6(%arg0: i32) -> (i32, i32) {
    %c0_i32 = arith.constant 0 : i32
    %c0_i32_0 = arith.constant 0 : i32
    return %arg0, %c0_i32 : i32, i32
  }
}

</mosaic_0001>

<bundles_post_ra>
// kernel: tpu_custom_call.1
= control target key start
LH: loop header
LB: loop body
LE: loop exit
PB: predicated region body
PF: predicated region fallthrough
CT: control target
= control target key end

     0   :  { %11 = vsyncpa [#allocation3], 0  ;;  %s1312_s0 = inlined_call_operand.hbm [shape: f32[16,32], index: 0, kind: input, shape index: {}]   ;;  %s1313_s1 = inlined_call_operand.hbm [shape: bf16[32,128], index: 1, kind: input, shape index: {}]   ;;  %s1314_s2 = inlined_call_operand.hbm [shape: bf16[128,128], index: 2, kind: input, shape index: {}]   ;;  %s1315_s3 = inlined_call_operand.hbm [shape: bf16[128,128], index: 3, kind: input, shape index: {}]   ;;  %s1316_s4 = inlined_call_operand.vmem [shape: f32[1,128], index: 4, kind: input, shape index: {}]   ;;  %s1317_s5 = inlined_call_operand.vmem [shape: f32[1,128], index: 5, kind: input, shape index: {}]   ;;  %s1318_s6 = inlined_call_operand.hbm [shape: bf16[16,128], index: 6, kind: output, shape index: {}]  }
   0x1   :  { %13 = vsyncpa [#allocation3 + $0x1], 0 }
   0x2   :  { %14 = vsyncpa [#allocation6], 0 }
   0x3   :  { %15 = vsyncpa [#allocation9], 0 }
   0x4   :  { %16 = vsyncpa [#allocation4], 0 }
   0x5   :  { %18 = vsyncpa [#allocation4 + $0x1], 0  ;;  %s1143_s21 = smov 0   ;;  %s1145_s22 = smov 0  }
   0x6   :  { %s1147_s23 = smov 0   ;;  %s1149_s24 = smov 0  }
   0x7 LB: > { %s197_s27 = sshll.u32 %s1313_s1, 4  ;;  %s1167_s28 = sadd.s32 4294967295, %s1100_s24   ;;  %s1100_s24 = sphi %s1149_s24, %s1329_s24   ;;  %s1096_s23 = sphi %s1147_s23, %s1328_s23   ;;  %s1092_s22 = sphi %s1145_s22, %s1327_s22   ;;  %s1088_s21 = sphi %s1143_s21, %s1326_s21   ;;  %s198_s27 = int_to_ptr.hbm [resolvable:$true] %s197_s27 }
   0x8   : > { %p705_p0 = scmp.ge.s32.totalorder %s1100_s24, 1  ;;  %p45_p1 = scmp.eq.s32.totalorder %s1167_s28, 0 }
   0x9   : > { %p186_p2 = scmp.lt.s32.totalorder %s1100_s24, 3  ;;  %s1102_s30 = smov [#allocation5]  }
   0xa   : > { %s199_s7 = sshll.u32 %s1102_s30, 4  ;;  %s211_s10 = sshll.u32 %s1314_s2, 4  ;;  %s200_s7 = int_to_ptr.vmem [resolvable:$true] %s199_s7  ;;  %s212_s10 = int_to_ptr.hbm [resolvable:$true] %s211_s10 }
   0xb   : > { %p1172_p3 = pnand %p705_p0, %p186_p2  ;;  %s225_s14 = sshll.u32 %s1315_s3, 4  ;;  %s226_s14 = int_to_ptr.hbm [resolvable:$true] %s225_s14 }
   0xc   : > { %s1103_s15 = smov [#allocation7]   ;;  %s1104_s17 = smov 64  }
   0xd   : > { %p830_p4 = pneg %p1172_p3  ;;  %s213_s16 = sshll.u32 %s1103_s15, 4  ;;  %s214_s16 = int_to_ptr.vmem [resolvable:$true] %s213_s16 }
   0xe   : > { %s1105_s18 = smov 4   ;;  %s1106_s19 = smov [#allocation8]  }
   0xf   : > { %p1184_p6 = pnand %p830_p4, %p45_p1  ;;  %s227_s20 = sshll.u32 %s1106_s19, 4  ;;  %s228_s20 = int_to_ptr.vmem [resolvable:$true] %s227_s20 }
  0x10   : > { %s704_s25 = sadd.s32 4294967294, %s1100_s24   ;;  %s1199_s26 = sadd.s32 1, %s1100_s24  }
  0x11   : > { %833 = dma.hbm_to_vmem [thread:$0]  (!%p1184_p6), %s198_s27, 256, %s200_s7, [#allocation6], %s1104_s17, %s1104_s17, %s1105_s18  }
  0x12   : > { %836 = dma.hbm_to_vmem [thread:$0]  (!%p1184_p6), %s212_s10, 1024, %s214_s16, [#allocation6], %s1104_s17, %s1104_s17, %s1105_s18  }
  0x13   : > { %839 = dma.hbm_to_vmem [thread:$0]  (!%p1184_p6), %s226_s14, 1024, %s228_s20, [#allocation9], %s1104_s17, %s1104_s17, %s1105_s18  }
  0x14   : > { %s31_s30 = sadd.s32 1, %s1096_s23  ;;  %s28_s27 = ssub.s32 %s1100_s24, %s1199_s26 }
  0x15   : > { %p38_p7 = scmp.ne.s32.totalorder %s1096_s23, %s1092_s22  ;;  %p29_p8 = scmp.eq.s32.totalorder %s28_s27, 0 }
  0x16   : > { %p39_p9 = scmp.eq.s32.totalorder %s1100_s24, 0  ;;  %p44_p10 = scmp.ne.s32.totalorder %s1092_s22, %s1088_s21 }
  0x17   : > { %p173_p11 = scmp.eq.s32.totalorder %s1167_s28, 1  ;;  %p179_p0 = scmp.eq.s32.totalorder %s704_s25, 1 }
  0x18   : > { %s1211_s7 = scalar_select %p29_p8, %s1096_s23, %s31_s30  }
  0x19   : > { %p1215_p12 = por %p45_p1, %p44_p10  ;;  %p1219_p13 = por %p173_p11, %p38_p7 }
  0x1a   : > { %p40_p2 = por %p39_p9, %p38_p7  ;;  %s247_s10 = sand.u32 1, %s1096_s23  }
  0x1b   : > { %p1224_p4 = por %p179_p0, %p44_p10  ;;  %p851_p6 = scmp.lt.s32.totalorder %s1100_s24, 2 }
  0x1c   : > { %s710_s12 = sshll.u32 %s247_s10, 3  ;;  %s711_s13 = sshll.u32 %s1100_s24, 3 }
  0x1d   : > { %s255_s16 = scalar_lea.hbm %s1312_s0, %s711_s13  ;;  %s251_s18 = scalar_lea.vmem [#allocation2], %s710_s12 }
  0x1e   : > { %s257_s17 = sshll.u32 %s255_s16, 4  ;;  %s259_s19 = sshll.u32 %s251_s18, 4  ;;  %s258_s17 = int_to_ptr.hbm [resolvable:$true] %s257_s17  ;;  %s260_s19 = int_to_ptr.vmem [resolvable:$true] %s259_s19 }
  0x1f   : > { %p1233_p8 = pnand %p851_p6, %p40_p2  ;;  %s248_s25 = scalar_lea.sflag [#allocation3], %s247_s10 }
  0x20   : > { %s996_s30 = sshra.s32 %s258_s17, 4  ;;  %s1003_s12 = scalar_lea.hbm %s1312_s0, 16  ;;  %s997_s30 = int_to_ptr.hbm [resolvable:$true] %s996_s30 }
  0x21   : > { %s998_s27 = scalar_lea.hbm %s997_s30, 8  ;;  %p1000_p9 = pneg %p1233_p8 }
  0x22   : > { %p999_p7 = scmp.ne.s32.totalorder %s997_s30, %s998_s27  ;;  %p1004_p0 = scmp.lt.s32.totalorder %s997_s30, %s1312_s0 }
  0x23   : > { %p1005_p2 = scmp.lt.s32.totalorder %s1003_s12, %s998_s27 }
  0x24   : > { %p1001_p10 = pnand %p1000_p9, %p999_p7 }
  0x25   : > { %p1006_p6 = por %p1005_p2, %p1004_p0 }
  0x26   : > { %p1002_p11 = pneg %p1001_p10 }
  0x28   : > { %p1007_p5 = pnand %p1006_p6, %p1002_p11 }
  0x2a   : > { %1010 = shalt.err (!%p1007_p5)
}
  0x2b   : > { %843 = dma.hbm_to_vmem [thread:$0]  (!%p1233_p8), %s258_s17, 128, %s260_s19, %s248_s25  }
  0x2c   : > { %268 = sbr.rel (%p1172_p3) target bundleno = 852 (0x354), region = 44  ;;  %s1250_s10 = sand.u32 (!%p1172_p3), 1, %s1092_s22  }
  0x2d   : > { %s713_s18 = sshll.u32 (!%p1172_p3), %s1250_s10, 3  ;;  %s271_s13 = scalar_lea.sflag (!%p1172_p3), [#allocation3], %s1250_s10 }
  0x2e   : > { %s274_s14 = scalar_lea.vmem (!%p1172_p3), [#allocation2], %s713_s18 }
  0x31   : > { %1071 = dma.done.wait (%p1215_p12), %s271_s13, 128  }
  0x32   : > { %1073 = vsyncadd (%p1215_p12), %s271_s13, 4294967168 }
  0x33   : > { %1075 = dma.done.wait (%p45_p1), [#allocation6], 1280  }
  0x34   : > { %1077 = vsyncadd (%p45_p1), [#allocation6], 4294966016 }
  0x35   : > { %1079 = dma.done.wait (%p45_p1), [#allocation9], 1024  }
  0x36   : > { %1081 = vsyncadd (%p45_p1), [#allocation9], 4294966272  ;;  %v797_v0 = vld [vmem:[#allocation5 + $0x8] sm:$0xff]  ;;  %v796_v2 = vld [vmem:[#allocation5] sm:$0xff]  ;;  %vm372_vm0 = vcmask 261120   ;;  %v1107_v36 = vmov 8.0  }
  0x37   : > { %v805_v1 = vld [vmem:[#allocation7 + $0x38] sm:$0xff]  ;;  %382 = vmatpush.bf16.msra.mxu0 %v797_v0  ;;  %v358_v3 = vld [vmem:[%s274_s14] sm:$0xff]  ;;  %v804_v5 = vld [vmem:[#allocation7 + $0x30] sm:$0xff]  ;;  %s717_s17 = sshll.u32 %s1250_s10, 2  ;;  %s793_s19 = sshll.u32 %s1167_s28, 2 }
  0x38   : > { %480 = vmatpush.bf16.xpose.msra.mxu1 %v805_v1  ;;  %504 = vmatpush.bf16.msra.mxu2 %v805_v1  ;;  %v359_v4 = vpack.c.bf16 %v358_v3, %v358_v3  ;;  %v803_v6 = vld [vmem:[#allocation7 + $0x28] sm:$0xff]  ;;  %v802_v7 = vld [vmem:[#allocation7 + $0x20] sm:$0xff]  ;;  %v801_v8 = vld [vmem:[#allocation7 + $0x18] sm:$0xff]  ;;  %s600_s12 = scalar_lea.hbm %s1318_s6, %s793_s19  ;;  %s318_s15 = scalar_lea.vmem [#allocation10], %s717_s17 }
  0x39   : > { %v800_v9 = vld [vmem:[#allocation7 + $0x10] sm:$0xff]  ;;  %v799_v10 = vld [vmem:[#allocation7 + $0x8] sm:$0xff]  ;;  %v798_v11 = vld [vmem:[#allocation7] sm:$0xff]  ;;  %s602_s16 = sshll.u32 %s318_s15, 4  ;;  %s604_s18 = sshll.u32 %s600_s12, 4  ;;  %s603_s16 = int_to_ptr.vmem [resolvable:$true] %s602_s16  ;;  %s605_s18 = int_to_ptr.hbm [resolvable:$true] %s604_s18 }
  0x3a   : > { %v894_v16 = vld [vmem:[%s1316_s4] ss:$0 sm:$0xff]  ;;  %v813_v24 = vld [vmem:[#allocation8 + $0x38] sm:$0xff]  ;;  %v812_v25 = vld [vmem:[#allocation8 + $0x30] sm:$0xff]  ;;  %s590_s28 = scalar_lea.sflag [#allocation4], %s1250_s10  ;;  %s1040_s13 = sshra.s32 %s605_s18, 4  ;;  %s1041_s13 = int_to_ptr.hbm [resolvable:$true] %s1040_s13 }
  0x3b   : > { %383 = vmatpush.bf16.msra.mxu0 %v796_v2  ;;  %574 = vmatpush.bf16.msra.mxu3 %v813_v24  ;;  %v811_v26 = vld [vmem:[#allocation8 + $0x28] sm:$0xff]  ;;  %v810_v27 = vld [vmem:[#allocation8 + $0x20] sm:$0xff]  ;;  %v809_v28 = vld [vmem:[#allocation8 + $0x18] sm:$0xff]  ;;  %s1042_s14 = scalar_lea.hbm %s1041_s13, 4  ;;  %s1046_s19 = scalar_lea.hbm %s1318_s6, 8 }
  0x3c   : > { %505 = vmatpush.bf16.msra.mxu2 %v804_v5  ;;  %v808_v30 = vld [vmem:[#allocation8 + $0x10] sm:$0xff]  ;;  %v807_v56 = vld [vmem:[#allocation8 + $0x8] sm:$0xff]  ;;  %v806_v57 = vld [vmem:[#allocation8] sm:$0xff]  ;;  %p1043_p1 = scmp.ne.s32.totalorder %s1041_s13, %s1042_s14  ;;  %p1047_p12 = scmp.lt.s32.totalorder %s1041_s13, %s1318_s6 }
  0x3d   : > { %p1048_p8 = scmp.lt.s32.totalorder %s1046_s19, %s1042_s14 }
  0x3e   : > { %726 = vmatmul.msk.bf16.vlgmr.msra.gmra.mxu0 %vm372_vm0, %v359_v4  ;;  %p1044_p3 = pnand %p1043_p1, %p1219_p13 }
  0x3f   : > { %575 = vmatpush.bf16.msra.mxu3 %v812_v25  ;;  %p1049_p7 = por %p1048_p8, %p1047_p12 }
  0x40   : > { %481 = vmatpush.bf16.xpose.msra.mxu1 %v804_v5  ;;  %506 = vmatpush.bf16.msra.mxu2 %v803_v6  ;;  %p1045_p5 = pneg %p1044_p3 }
  0x42   : > { %p1050_p9 = pnand %p1049_p7, %p1045_p5 }
  0x43   : > { %576 = vmatpush.bf16.msra.mxu3 %v811_v26 }
  0x44   : > { %507 = vmatpush.bf16.msra.mxu2 %v802_v7 }
  0x47   : > { %577 = vmatpush.bf16.msra.mxu3 %v810_v27 }
  0x48   : > { %482 = vmatpush.bf16.xpose.msra.mxu1 %v803_v6  ;;  %508 = vmatpush.bf16.msra.mxu2 %v801_v8 }
  0x4b   : > { %578 = vmatpush.bf16.msra.mxu3 %v809_v28 }
  0x4c   : > { %509 = vmatpush.bf16.msra.mxu2 %v800_v9 }
  0x4f   : > { %579 = vmatpush.bf16.msra.mxu3 %v808_v30 }
  0x50   : > { %483 = vmatpush.bf16.xpose.msra.mxu1 %v802_v7  ;;  %510 = vmatpush.bf16.msra.mxu2 %v799_v10 }
  0x53   : > { %580 = vmatpush.bf16.msra.mxu3 %v807_v56 }
  0x54   : > { %511 = vmatpush.bf16.msra.mxu2 %v798_v11 }
  0x57   : > { %581 = vmatpush.bf16.msra.mxu3 %v806_v57 }
  0x58   : > { %484 = vmatpush.bf16.xpose.msra.mxu1 %v801_v8 }
  0x60   : > { %485 = vmatpush.bf16.xpose.msra.mxu1 %v800_v9 }
  0x68   : > { %486 = vmatpush.bf16.xpose.msra.mxu1 %v799_v10 }
  0x70   : > { %487 = vmatpush.bf16.xpose.msra.mxu1 %v798_v11  ;;  %v895_v11 = vld [vmem:[%s1317_s5] ss:$0 sm:$0xff] }
  0xbb   : > { %v1266_v12 = vpop.f32.mrf.mxu0 }
  0xbc   : > { %v428_v13 = vpack.c.bf16 %v1266_v12, %v1266_v12  ;;  %v389_v14 = vand.u32 2147483647, %v1266_v12 }
  0xbe   : > { %488 = vmatmul.bf16.vlgmr.msra.gmra.mxu1 %v428_v13  ;;  %390 = vadd.xlane.f32.xlu1 %v389_v14 }
  0xc3   : > { %v387_v15 = vpop.f32.mrf.mxu0 }
 0x131   : > { %v391_v35 = vpop.xlane.xlu1 %390 }
 0x132   : > { %v392_v37 = vmul.f32 0.03125, %v391_v35 }
 0x134   : > { %v393_v38 = vrot.slane %v392_v37, 4 }
 0x136   : > { %v394_v40 = vadd.f32 %v393_v38, %v392_v37 }
 0x138   : > { %v395_v42 = vrot.slane %v394_v40, 2 }
 0x13a   : > { %v396_v44 = vadd.f32 %v395_v42, %v394_v40 }
 0x13b   : > { %v489_v17 = vpop.f32.mrf.mxu1 }
 0x13c   : > { %v490_v18 = vadd.f32 %v894_v16, %v489_v17  ;;  %v397_v46 = vrot.slane %v396_v44, 1 }
 0x13e   : > { %493 = vmax.xlane.f32.xlu0 %v490_v18  ;;  %v398_v48 = vadd.f32 %v397_v46, %v396_v44 }
 0x143   : > { %v491_v19 = vpop.f32.mrf.mxu1 }
 0x1b1   : > { %v494_v20 = vpop.xlane.xlu0 %493 }
 0x1b2   : > { %v495_v21 = vsub.f32 %v490_v18, %v494_v20 }
 0x1b4   : > { %v496_v22 = vmul.f32 1.442695, %v495_v21 }
 0x1b6   : > { %896 = vpow2.f32 %v496_v22 }
 0x1bc   : > { %v897_v23 = vpop.eup %896 }
 0x1bd   : > { %498 = vadd.xlane.f32.xlu0 %v897_v23 }
 0x230   : > { %v499_v29 = vpop.xlane.xlu0 %498 }
 0x231   : > { %v500_v31 = vadd.f32 1e-06, %v499_v29 }
 0x233   : > { %898 = vrcp.f32 %v500_v31 }
 0x234   : > { %900 = vrcp.f32 %v1107_v36 }
 0x239   : > { %v899_v32 = vpop.eup %898 }
 0x23a   : > { %v502_v33 = vmul.f32 %v899_v32, %v897_v23  ;;  %v901_v39 = vpop.eup %900 }
 0x23b   : > { %v400_v41 = vmul.f32 8.0, %v901_v39  ;;  %vm404_vm1 = vweird.f32 %v901_v39 }
 0x23c   : > { %v503_v34 = vpack.c.bf16 %v502_v33, %v502_v33 }
 0x23d   : > { %v401_v43 = vsub.f32 1.0, %v400_v41 }
 0x23e   : > { %512 = vmatmul.bf16.vlgmr.msra.gmra.mxu2 %v503_v34 }
 0x23f   : > { %v402_v45 = vmul.f32 %v901_v39, %v401_v43 }
 0x241   : > { %v403_v47 = vadd.f32 %v901_v39, %v402_v45 }
 0x243   : > { %v405_v49 = vsel %vm404_vm1, %v901_v39, %v403_v47 }
 0x244   : > { %v406_v50 = vmul.f32 %v405_v49, %v398_v48 }
 0x246   : > { %v407_v51 = vsub.f32 %v392_v37, %v406_v50 }
 0x248   : > { %v727_v52 = vmul.f32 -1000000.0, %v407_v51 }
 0x24a   : > { %v410_v53 = vmul.f32 1.442695, %v727_v52 }
 0x24c   : > { %902 = vpow2.f32 %v410_v53 }
 0x252   : > { %v903_v54 = vpop.eup %902 }
 0x253   : > { %v412_v55 = vadd.f32 1.0, %v903_v54 }
 0x255   : > { %904 = vrcp.f32 %v412_v55  ;;  %v424_v63 = vand.u32 2147483648, %v412_v55  ;;  %vm418_vm3 = vweird.f32 %v412_v55  ;;  %v422_v0 = vand.u32 2147483647, %v412_v55 }
 0x257   : > { %v425_v2 = vor.u32 1.1754944e-38, %v424_v63  ;;  %vm423_vm5 = vcmp.eq.f32.partialorder %v422_v0, 8.507059e+37 }
 0x25b   : > { %v905_v58 = vpop.eup %904 }
 0x25c   : > { %v414_v59 = vmul.f32 %v905_v58, %v412_v55  ;;  %vm419_vm2 = vweird.f32 %v905_v58 }
 0x25d   : > { %vm420_vm4 = vmor %vm418_vm3, %vm419_vm2 }
 0x25e   : > { %v415_v60 = vsub.f32 1.0, %v414_v59 }
 0x260   : > { %v416_v61 = vmul.f32 %v905_v58, %v415_v60 }
 0x262   : > { %v417_v62 = vadd.f32 %v905_v58, %v416_v61 }
 0x264   : > { %v421_v1 = vsel %vm420_vm4, %v905_v58, %v417_v62 }
 0x265   : > { %v426_v3 = vsel %vm423_vm5, %v425_v2, %v421_v1 }
 0x266   : > { %v518_v4 = vsub.f32 1.0, %v426_v3  ;;  %v525_v13 = vmul.f32 %v895_v11, %v426_v3 }
 0x268   : > { %v519_v7 = vmul.f32 %v518_v4, %v1266_v12 }
 0x2c1   : > { %v513_v5 = vpop.f32.mrf.mxu2 }
 0x2c2   : > { %v517_v6 = vmul.f32 %v513_v5, %v426_v3 }
 0x2c4   : > { %v520_v8 = vadd.f32 %v519_v7, %v517_v6 }
 0x2c6   : > { %v521_v9 = vpack.c.bf16 %v520_v8, %v520_v8 }
 0x2c8   : > { %582 = vmatmul.bf16.vlgmr.msra.gmra.mxu3 %v521_v9 }
 0x2c9   : > { %v515_v10 = vpop.f32.mrf.mxu2 }
 0x34b   : > { %v583_v14 = vpop.f32.mrf.mxu3 }
 0x34c   : > { %v584_v12 = vadd.f32 %v583_v14, %v525_v13 }
 0x34e   : > { %v587_v15 = vpack.c.bf16 %v584_v12, %v584_v12 }
 0x350   : > { %588 = vst [vmem:[%s318_s15] sm:$0xf] %v587_v15 }
 0x351   : > { %1053 = shalt.err (!%p1050_p9)
}
 0x352   : > { %828 = dma.vmem_to_hbm [thread:$0]  (%p1219_p13), %s603_s16, 64, %s605_s18, %s590_s28  }
 0x353   : > { %v585_v16 = vpop.f32.mrf.mxu3 }
 0x354 PF: > { %s616_s10 = sand.u32 1, %s1088_s21   ;;  %p1325_p10 = scmp.ge.s32.totalorder %s1100_s24, 2 }
 0x355   : > { %s617_s25 = scalar_lea.sflag [#allocation4], %s616_s10 }
 0x356   : > { %p845_p11 = pnand %p1325_p10, %p1224_p4 }
 0x358   : > { %p846_p0 = pneg %p845_p11 }
 0x35a   : > { %1083 = dma.done.wait (%p846_p0), %s617_s25, 64  }
 0x35b   : > { %1085 = vsyncadd (%p846_p0), %s617_s25, 4294967232  ;;  %p21_p2 = scmp.ge.s32.totalorder %s1199_s26, 4   ;;  %s1326_s21 = smov %s1092_s22 }
 0x35c   : > { %s1327_s22 = smov %s1096_s23  ;;  %s1328_s23 = smov %s1211_s7 }
 0x35d   : > { %s1329_s24 = smov %s1199_s26  ;;  %23 = sbr.rel (!%p21_p2) target bundleno = 7 (0x7), region = 101 }
 0x362   :  { %623 = vsyncpa [#allocation3], 1 }
 0x363   :  { %625 = vsyncpa [#allocation3 + $0x1], 1 }
 0x364   :  { %626 = vsyncpa [#allocation6], 1 }
 0x365   :  { %627 = vsyncpa [#allocation9], 1 }
 0x366   :  { %628 = vsyncpa [#allocation4], 1 }
 0x367   :  { %630 = vsyncpa [#allocation4 + $0x1], 1 }

</bundles_post_ra>
